<compile_context>
chip_gen: v6e
topology: v6e:2x2x1
jax: 0.10.0
libtpu: 0.0.40
codegen_flags: <defaults>
</compile_context>

<pallas_src>
import functools

import numpy as np
import jax
import jax.numpy as jnp
from jax import lax
from jax.experimental import pallas as pl
from jax.experimental.pallas import tpu as pltpu

LN_EPS = 1e-5  # nn.LayerNorm default eps


def mha_kernel(q_in_ref, k_in_ref, v_in_ref,
               wqh_ref, wkh_ref, wvh_ref, woh_ref,
               bo_ref, ln_g_ref, ln_b_ref,
               out_ref, attn_ref,
               *, num_heads):
    """One grid step processes a tile of `block_b` batch elements.

    q/k/v_in_ref: (TB, L, D) input blocks (native dtype, fed straight to MXU).
    wqh/wkh/wvh_ref: (H, D, dh) per-head projection weights (scale folded into wq).
    woh_ref: (H, dh, D) per-head output-projection weights.
    out_ref: (TB, L, D).  attn_ref: (TB*H, L, L) in PyTorch's (B*H, Lq, Lk) order.
    """
    TB, L, D = q_in_ref.shape
    H = num_heads
    dh = D // H
    BH = TB * H
    in_dtype = q_in_ref.dtype

    # Leading-dim broadcasts only (no lane/sublane relayouts): replicate the
    # (TB, L, D) activations across heads and the (H, ...) weights across the
    # batch tile so every matmul below is a single leading-batch 3-D einsum.
    def rows_per_head(ref):                       # (TB, L, D) -> (TB*H, L, D)
        x = ref[...]
        return jnp.broadcast_to(x[:, None], (TB, H, L, D)).reshape(BH, L, D)

    def w_per_batch(ref):                         # (H, a, b) -> (TB*H, a, b)
        w = ref[...]
        return jnp.broadcast_to(w[None], (TB,) + w.shape).reshape((BH,) + w.shape[1:])

    # Q/K/V projections: batched (L, D) @ (D, dh) on the MXU, f32 accumulation.
    qh = jnp.einsum('bld,bde->ble', rows_per_head(q_in_ref), w_per_batch(wqh_ref),
                    preferred_element_type=jnp.float32).astype(in_dtype)   # (BH, L, dh)
    kh = jnp.einsum('bld,bde->ble', rows_per_head(k_in_ref), w_per_batch(wkh_ref),
                    preferred_element_type=jnp.float32).astype(in_dtype)
    vh = jnp.einsum('bld,bde->ble', rows_per_head(v_in_ref), w_per_batch(wvh_ref),
                    preferred_element_type=jnp.float32).astype(in_dtype)

    # Scaled dot-product attention (scale pre-folded into wq), batched over TB*H.
    s = jnp.einsum('bqd,bkd->bqk', qh, kh,
                   preferred_element_type=jnp.float32)                     # (BH, L, L)
    s = s - jnp.max(s, axis=-1, keepdims=True)
    p = jnp.exp(s)
    inv = pl.reciprocal(jnp.sum(p, axis=-1, keepdims=True), approx=True)   # EUP slot
    attn = p * inv
    # TODO(synk): optional boolean attn_mask (masked_fill with -inf) not implemented.
    # TODO(synk): attention/projection dropout not implemented (eval semantics).
    attn_ref[...] = attn.astype(attn_ref.dtype)    # single dense store per step

    ctx = jnp.einsum('bqk,bkd->bqd', attn.astype(in_dtype), vh,
                     preferred_element_type=jnp.float32)                   # (BH, L, dh)

    # Output projection per head, then head-sum  ==  concat-heads @ Wo.
    po = jnp.einsum('bld,bde->ble', ctx.astype(in_dtype), w_per_batch(woh_ref),
                    preferred_element_type=jnp.float32)                    # (BH, L, D)
    proj = jnp.sum(po.reshape(TB, H, L, D), axis=1)                        # (TB, L, D)

    # Bias + residual + LayerNorm: f32 VPU math, single store of the result.
    y = q_in_ref[...].astype(jnp.float32) + proj + bo_ref[...].astype(jnp.float32)
    mean = jnp.mean(y, axis=-1, keepdims=True)
    cen = y - mean
    var = jnp.mean(cen * cen, axis=-1, keepdims=True)
    yn = cen * lax.rsqrt(var + LN_EPS)
    out_ref[...] = (yn * ln_g_ref[...].astype(jnp.float32)
                    + ln_b_ref[...].astype(jnp.float32)).astype(out_ref.dtype)


def _vmem_bytes_estimate(block_b, L, D, H, in_isize, attn_isize):
    """Rough per-step VMEM footprint: pipeline buffers + live intermediates."""
    dh = D // H
    bh = block_b * H
    f32 = 4
    io = 2 * (4 * block_b * L * D * in_isize       # q/k/v in + out, double-buffered
              + bh * L * L * attn_isize)           # attention-map output block
    weights = 2 * ((3 * H * D * dh + H * dh * D + 3 * D) * in_isize)
    live = (3 * bh * L * D * in_isize              # head-broadcast q/k/v inputs
            + 4 * bh * D * dh * in_isize           # batch-broadcast per-head weights
            + 3 * bh * L * dh * f32                # projected q/k/v heads
            + 2 * bh * L * L * f32                 # scores + probs
            + bh * L * dh * f32                    # context
            + bh * L * D * f32                     # per-head output projection
            + 3 * block_b * L * D * f32)           # head-sum / residual / LN temps
    return io + weights + live


def _pick_block_b(B, L, D, H, in_isize, attn_isize, vmem_budget_bytes):
    """Largest batch tile that (a) divides B, (b) fits the VMEM budget and
    (c) keeps the grid >= 2 steps when B >= 2 (both v7x TensorCores busy)."""
    best = 1
    for tb in range(1, B + 1):
        if B % tb:
            continue
        if B >= 2 and (B // tb) < 2:
            continue
        if _vmem_bytes_estimate(tb, L, D, H, in_isize, attn_isize) <= vmem_budget_bytes:
            best = tb
    return best


def multi_head_attention(key_in, value_in, query_in,
                         wq, wk, wv, wo, bo, ln_g, ln_b,
                         *, num_heads, block_b=None, attn_dtype=None,
                         vmem_budget_bytes=40 * 2**20):
    """key/value/query: (B, L, D).  Projection weights (D, D) in (in, out)
    layout (transpose of nn.Linear storage); bo / ln_g / ln_b: (1, D).

    Returns (output (B, L, D), attention (B*num_heads, L, L)), matching the
    PyTorch module's forward in eval mode.
    """
    B, L, D = query_in.shape
    assert key_in.shape == (B, L, D) and value_in.shape == (B, L, D)
    assert D % num_heads == 0
    H = num_heads
    dh = D // H

    in_dtype = query_in.dtype
    attn_dtype = np.dtype(attn_dtype) if attn_dtype is not None else np.dtype(in_dtype)
    in_isize = np.dtype(in_dtype).itemsize
    attn_isize = attn_dtype.itemsize

    # Constant prep (wrapper-side XLA, free in the hot loop):
    #  * fold the softmax scale (dh ** -0.5) into the Q projection weights;
    #  * split weights per head so the kernel never slices the lane axis:
    #      wq/wk/wv: (D, D) -> (H, D, dh);  wo: (D, D) -> (H, dh, D).
    scale = jnp.asarray(float(dh) ** -0.5, wq.dtype)

    def split_out_dim(w):                # output columns of head h -> (H, D, dh)
        return jnp.transpose(w.reshape(D, H, dh), (1, 0, 2))

    wq_h = split_out_dim(wq * scale)
    wk_h = split_out_dim(wk)
    wv_h = split_out_dim(wv)
    wo_h = wo.reshape(H, dh, D)          # input rows of head h -> (H, dh, D)
    # TODO(synk): for self-attention (key is value is query) the three Q/K/V
    # projections could be fused into one (D, 3D) matmul fed by a single slab.

    if block_b is None:
        block_b = _pick_block_b(B, L, D, H, in_isize, attn_isize, vmem_budget_bytes)
    assert B % block_b == 0, (B, block_b)
    grid = (B // block_b,)

    est = _vmem_bytes_estimate(block_b, L, D, H, in_isize, attn_isize)
    vmem_limit = int(min(max(16 * 2**20, 1.25 * est), 60 * 2**20))

    def const_spec(a):
        # Full-array block with a constant index map (weights / bias / LN params).
        # TODO(synk): pipeline_mode=pl.Buffered(1) would halve the VMEM of these
        # never-changing blocks; left at the default to keep lowering robust.
        nd = a.ndim
        return pl.BlockSpec(a.shape, lambda i, _nd=nd: (0,) * _nd)

    kernel = functools.partial(mha_kernel, num_heads=H)

    out, attn = pl.pallas_call(
        kernel,
        out_shape=(
            jax.ShapeDtypeStruct((B, L, D), in_dtype),
            jax.ShapeDtypeStruct((B * H, L, L), attn_dtype),
        ),
        grid=grid,
        in_specs=[
            pl.BlockSpec((block_b, L, D), lambda i: (i, 0, 0)),   # query tile
            pl.BlockSpec((block_b, L, D), lambda i: (i, 0, 0)),   # key tile
            pl.BlockSpec((block_b, L, D), lambda i: (i, 0, 0)),   # value tile
            const_spec(wq_h), const_spec(wk_h), const_spec(wv_h), const_spec(wo_h),
            const_spec(bo), const_spec(ln_g), const_spec(ln_b),
        ],
        out_specs=(
            pl.BlockSpec((block_b, L, D), lambda i: (i, 0, 0)),
            pl.BlockSpec((block_b * H, L, L), lambda i: (i, 0, 0)),
        ),
        compiler_params=pltpu.CompilerParams(
            dimension_semantics=("parallel",),
            vmem_limit_bytes=vmem_limit),
    )(query_in, key_in, value_in, wq_h, wk_h, wv_h, wo_h, bo, ln_g, ln_b)

    return out, attn


def ref_forward(key_in, value_in, query_in, wq, wk, wv, wo, bo, ln_g, ln_b,
                num_heads):
    """Pure-JAX reference mirroring the PyTorch forward (eval mode)."""
    B, L, D = query_in.shape
    dh = D // num_heads
    scale = float(dh) ** -0.5

    q = query_in @ wq
    k = key_in @ wk
    v = value_in @ wv

    def split_heads(x):
        return (x.reshape(B, L, num_heads, dh)
                 .transpose(0, 2, 1, 3)
                 .reshape(B * num_heads, L, dh))

    qh, kh, vh = split_heads(q), split_heads(k), split_heads(v)
    attn = jnp.einsum('bld,bmd->blm', qh, kh) * scale
    attn = jax.nn.softmax(attn, axis=-1)
    ctx = jnp.einsum('blm,bmd->bld', attn, vh)
    ctx = (ctx.reshape(B, num_heads, L, dh)
              .transpose(0, 2, 1, 3)
              .reshape(B, L, D))

    out = ctx @ wo + bo
    out = query_in + out
    mean = out.mean(-1, keepdims=True)
    var = ((out - mean) ** 2).mean(-1, keepdims=True)
    out = (out - mean) / jnp.sqrt(var + LN_EPS) * ln_g + ln_b
    return out, attn


if __name__ == "__main__":
    key = jax.random.PRNGKey(0)
    (kq, kk, kv, kwq, kwk, kwv, kwo, kbo, kg, kb) = jax.random.split(key, 10)

    B, L, D, H = 2, 16, 32, 4   # batch, seq, model_dim, num_heads (dh = 8)

    query = jax.random.normal(kq, (B, L, D), jnp.float32)
    key_in = jax.random.normal(kk, (B, L, D), jnp.float32)
    value_in = jax.random.normal(kv, (B, L, D), jnp.float32)

    # Linear weights in (in, out) layout (transpose of PyTorch's storage).
    wq = 0.1 * jax.random.normal(kwq, (D, D), jnp.float32)
    wk = 0.1 * jax.random.normal(kwk, (D, D), jnp.float32)
    wv = 0.1 * jax.random.normal(kwv, (D, D), jnp.float32)
    wo = 0.1 * jax.random.normal(kwo, (D, D), jnp.float32)
    bo = 0.1 * jax.random.normal(kbo, (1, D), jnp.float32)
    ln_g = 1.0 + 0.1 * jax.random.normal(kg, (1, D), jnp.float32)
    ln_b = 0.1 * jax.random.normal(kb, (1, D), jnp.float32)

    out, attn = multi_head_attention(key_in, value_in, query,
                                     wq, wk, wv, wo, bo, ln_g, ln_b,
                                     num_heads=H)
    out = jax.block_until_ready(out)
    attn = jax.block_until_ready(attn)

    ref_out, ref_attn = ref_forward(key_in, value_in, query,
                                    wq, wk, wv, wo, bo, ln_g, ln_b, H)

    assert out.shape == (B, L, D), out.shape
    assert attn.shape == (B * H, L, L), attn.shape
    # Tolerance relaxed vs. an exact softmax because the kernel uses the EUP
    # approximate reciprocal; structural errors would be orders of magnitude larger.
    assert jnp.allclose(out, ref_out, atol=1e-2, rtol=1e-2), \
        float(jnp.max(jnp.abs(out - ref_out)))
    assert jnp.allclose(attn, ref_attn, atol=1e-2, rtol=1e-2), \
        float(jnp.max(jnp.abs(attn - ref_attn)))

    print("KERNEL_OK")
</pallas_src>

<mosaic_0001>
module attributes {stable_mosaic.version = 11 : i64} {
  func.func @mha_kernel(%arg0: i32, %arg1: memref<1x16x32xf32, #tpu.memory_space<vmem>>, %arg2: memref<1x16x32xf32, #tpu.memory_space<vmem>>, %arg3: memref<1x16x32xf32, #tpu.memory_space<vmem>>, %arg4: memref<4x32x8xf32, #tpu.memory_space<vmem>>, %arg5: memref<4x32x8xf32, #tpu.memory_space<vmem>>, %arg6: memref<4x32x8xf32, #tpu.memory_space<vmem>>, %arg7: memref<4x8x32xf32, #tpu.memory_space<vmem>>, %arg8: memref<1x32xf32, #tpu.memory_space<vmem>>, %arg9: memref<1x32xf32, #tpu.memory_space<vmem>>, %arg10: memref<1x32xf32, #tpu.memory_space<vmem>>, %arg11: memref<1x16x32xf32, #tpu.memory_space<vmem>>, %arg12: memref<4x16x16xf32, #tpu.memory_space<vmem>>) attributes {dimension_semantics = [#tpu.dimension_semantics<parallel>], iteration_bounds = array<i64: 2>, scalar_prefetch = 0 : i64, scratch_operands = 0 : i64, tpu.core_type = #tpu.core_type<tc>, window_params = [{transform_indices = @transform_0, window_bounds = array<i64: 1, 16, 32>}, {transform_indices = @transform_1, window_bounds = array<i64: 1, 16, 32>}, {transform_indices = @transform_2, window_bounds = array<i64: 1, 16, 32>}, {pipeline_mode = #tpu.pipeline_mode<synchronous>, transform_indices = @transform_3, window_bounds = array<i64: 4, 32, 8>}, {pipeline_mode = #tpu.pipeline_mode<synchronous>, transform_indices = @transform_4, window_bounds = array<i64: 4, 32, 8>}, {pipeline_mode = #tpu.pipeline_mode<synchronous>, transform_indices = @transform_5, window_bounds = array<i64: 4, 32, 8>}, {pipeline_mode = #tpu.pipeline_mode<synchronous>, transform_indices = @transform_6, window_bounds = array<i64: 4, 8, 32>}, {pipeline_mode = #tpu.pipeline_mode<synchronous>, transform_indices = @transform_7, window_bounds = array<i64: 1, 32>}, {pipeline_mode = #tpu.pipeline_mode<synchronous>, transform_indices = @transform_8, window_bounds = array<i64: 1, 32>}, {pipeline_mode = #tpu.pipeline_mode<synchronous>, transform_indices = @transform_9, window_bounds = array<i64: 1, 32>}, {transform_indices = @transform_10, window_bounds = array<i64: 1, 16, 32>}, {transform_indices = @transform_11, window_bounds = array<i64: 4, 16, 16>}]} {
    %c0 = arith.constant 0 : index
    %c0_0 = arith.constant 0 : index
    %c0_1 = arith.constant 0 : index
    %0 = vector.load %arg1[%c0, %c0_0, %c0_1] : memref<1x16x32xf32, #tpu.memory_space<vmem>>, vector<1x16x32xf32>
    %1 = vector.shape_cast %0 : vector<1x16x32xf32> to vector<1x1x16x32xf32>
    %2 = vector.shape_cast %1 : vector<1x1x16x32xf32> to vector<1x1x16x32xf32>
    %3 = vector.broadcast %2 : vector<1x1x16x32xf32> to vector<1x4x16x32xf32>
    %4 = vector.shape_cast %3 : vector<1x4x16x32xf32> to vector<4x16x32xf32>
    %c0_2 = arith.constant 0 : index
    %c0_3 = arith.constant 0 : index
    %c0_4 = arith.constant 0 : index
    %5 = vector.load %arg4[%c0_2, %c0_3, %c0_4] : memref<4x32x8xf32, #tpu.memory_space<vmem>>, vector<4x32x8xf32>
    %6 = vector.shape_cast %5 : vector<4x32x8xf32> to vector<1x4x32x8xf32>
    %7 = vector.shape_cast %6 : vector<1x4x32x8xf32> to vector<4x32x8xf32>
    "tpu.trace_start"() <{level = 10 : i32, message = "bld,bde->ble"}> : () -> ()
    %cst = arith.constant dense<0.000000e+00> : vector<4x16x8xf32>
    %8 = tpu.matmul %4, %7, %cst {dimension_numbers = #tpu.dot_dimension_numbers<[2], [1], [1], [2], [0, 0, 0, 1, 1, 2], [0], [0]>} : vector<4x16x32xf32>, vector<4x32x8xf32>, vector<4x16x8xf32> -> vector<4x16x8xf32>
    "tpu.trace_stop"() : () -> ()
    %c0_5 = arith.constant 0 : index
    %c0_6 = arith.constant 0 : index
    %c0_7 = arith.constant 0 : index
    %9 = vector.load %arg2[%c0_5, %c0_6, %c0_7] : memref<1x16x32xf32, #tpu.memory_space<vmem>>, vector<1x16x32xf32>
    %10 = vector.shape_cast %9 : vector<1x16x32xf32> to vector<1x1x16x32xf32>
    %11 = vector.shape_cast %10 : vector<1x1x16x32xf32> to vector<1x1x16x32xf32>
    %12 = vector.broadcast %11 : vector<1x1x16x32xf32> to vector<1x4x16x32xf32>
    %13 = vector.shape_cast %12 : vector<1x4x16x32xf32> to vector<4x16x32xf32>
    %c0_8 = arith.constant 0 : index
    %c0_9 = arith.constant 0 : index
    %c0_10 = arith.constant 0 : index
    %14 = vector.load %arg5[%c0_8, %c0_9, %c0_10] : memref<4x32x8xf32, #tpu.memory_space<vmem>>, vector<4x32x8xf32>
    %15 = vector.shape_cast %14 : vector<4x32x8xf32> to vector<1x4x32x8xf32>
    %16 = vector.shape_cast %15 : vector<1x4x32x8xf32> to vector<4x32x8xf32>
    "tpu.trace_start"() <{level = 10 : i32, message = "bld,bde->ble"}> : () -> ()
    %cst_11 = arith.constant dense<0.000000e+00> : vector<4x16x8xf32>
    %17 = tpu.matmul %13, %16, %cst_11 {dimension_numbers = #tpu.dot_dimension_numbers<[2], [1], [1], [2], [0, 0, 0, 1, 1, 2], [0], [0]>} : vector<4x16x32xf32>, vector<4x32x8xf32>, vector<4x16x8xf32> -> vector<4x16x8xf32>
    "tpu.trace_stop"() : () -> ()
    %c0_12 = arith.constant 0 : index
    %c0_13 = arith.constant 0 : index
    %c0_14 = arith.constant 0 : index
    %18 = vector.load %arg3[%c0_12, %c0_13, %c0_14] : memref<1x16x32xf32, #tpu.memory_space<vmem>>, vector<1x16x32xf32>
    %19 = vector.shape_cast %18 : vector<1x16x32xf32> to vector<1x1x16x32xf32>
    %20 = vector.shape_cast %19 : vector<1x1x16x32xf32> to vector<1x1x16x32xf32>
    %21 = vector.broadcast %20 : vector<1x1x16x32xf32> to vector<1x4x16x32xf32>
    %22 = vector.shape_cast %21 : vector<1x4x16x32xf32> to vector<4x16x32xf32>
    %c0_15 = arith.constant 0 : index
    %c0_16 = arith.constant 0 : index
    %c0_17 = arith.constant 0 : index
    %23 = vector.load %arg6[%c0_15, %c0_16, %c0_17] : memref<4x32x8xf32, #tpu.memory_space<vmem>>, vector<4x32x8xf32>
    %24 = vector.shape_cast %23 : vector<4x32x8xf32> to vector<1x4x32x8xf32>
    %25 = vector.shape_cast %24 : vector<1x4x32x8xf32> to vector<4x32x8xf32>
    "tpu.trace_start"() <{level = 10 : i32, message = "bld,bde->ble"}> : () -> ()
    %cst_18 = arith.constant dense<0.000000e+00> : vector<4x16x8xf32>
    %26 = tpu.matmul %22, %25, %cst_18 {dimension_numbers = #tpu.dot_dimension_numbers<[2], [1], [1], [2], [0, 0, 0, 1, 1, 2], [0], [0]>} : vector<4x16x32xf32>, vector<4x32x8xf32>, vector<4x16x8xf32> -> vector<4x16x8xf32>
    "tpu.trace_stop"() : () -> ()
    "tpu.trace_start"() <{level = 10 : i32, message = "bqd,bkd->bqk"}> : () -> ()
    %cst_19 = arith.constant dense<0.000000e+00> : vector<4x16x16xf32>
    %27 = tpu.matmul %8, %17, %cst_19 {dimension_numbers = #tpu.dot_dimension_numbers<[2], [2], [1], [1], [0, 0, 0, 1, 1, 1], [0], [0]>} : vector<4x16x8xf32>, vector<4x16x8xf32>, vector<4x16x16xf32> -> vector<4x16x16xf32>
    "tpu.trace_stop"() : () -> ()
    %cst_20 = arith.constant dense<0xFF800000> : vector<4x16xf32>
    %28 = vector.multi_reduction <maximumf>, %27, %cst_20 [2] : vector<4x16x16xf32> to vector<4x16xf32>
    %29 = vector.shape_cast %28 : vector<4x16xf32> to vector<4x16x1xf32>
    %30 = vector.broadcast %29 : vector<4x16x1xf32> to vector<4x16x16xf32>
    %31 = arith.subf %27, %30 : vector<4x16x16xf32>
    %32 = math.exp %31 : vector<4x16x16xf32>
    %cst_21 = arith.constant dense<0.000000e+00> : vector<4x16xf32>
    %33 = vector.multi_reduction <add>, %32, %cst_21 [2] : vector<4x16x16xf32> to vector<4x16xf32>
    %34 = vector.shape_cast %33 : vector<4x16xf32> to vector<4x16x1xf32>
    %35 = tpu.reciprocal %34 {approx = true} : vector<4x16x1xf32> -> vector<4x16x1xf32>
    %36 = vector.broadcast %35 : vector<4x16x1xf32> to vector<4x16x16xf32>
    %37 = arith.mulf %32, %36 : vector<4x16x16xf32>
    %c0_22 = arith.constant 0 : index
    %c0_23 = arith.constant 0 : index
    %c0_24 = arith.constant 0 : index
    %38 = vector.load %arg12[%c0_22, %c0_23, %c0_24] : memref<4x16x16xf32, #tpu.memory_space<vmem>>, vector<4x16x16xf32>
    tpu.vector_store %arg12[%c0_22, %c0_23, %c0_24], %37 {strides = array<i32>} : memref<4x16x16xf32, #tpu.memory_space<vmem>>, vector<4x16x16xf32>,
    "tpu.trace_start"() <{level = 10 : i32, message = "bqk,bkd->bqd"}> : () -> ()
    %cst_25 = arith.constant dense<0.000000e+00> : vector<4x16x8xf32>
    %39 = tpu.matmul %37, %26, %cst_25 {dimension_numbers = #tpu.dot_dimension_numbers<[2], [1], [1], [2], [0, 0, 0, 1, 1, 2], [0], [0]>} : vector<4x16x16xf32>, vector<4x16x8xf32>, vector<4x16x8xf32> -> vector<4x16x8xf32>
    "tpu.trace_stop"() : () -> ()
    %c0_26 = arith.constant 0 : index
    %c0_27 = arith.constant 0 : index
    %c0_28 = arith.constant 0 : index
    %40 = vector.load %arg7[%c0_26, %c0_27, %c0_28] : memref<4x8x32xf32, #tpu.memory_space<vmem>>, vector<4x8x32xf32>
    %41 = vector.shape_cast %40 : vector<4x8x32xf32> to vector<1x4x8x32xf32>
    %42 = vector.shape_cast %41 : vector<1x4x8x32xf32> to vector<4x8x32xf32>
    "tpu.trace_start"() <{level = 10 : i32, message = "bld,bde->ble"}> : () -> ()
    %cst_29 = arith.constant dense<0.000000e+00> : vector<4x16x32xf32>
    %43 = tpu.matmul %39, %42, %cst_29 {dimension_numbers = #tpu.dot_dimension_numbers<[2], [1], [1], [2], [0, 0, 0, 1, 1, 2], [0], [0]>} : vector<4x16x8xf32>, vector<4x8x32xf32>, vector<4x16x32xf32> -> vector<4x16x32xf32>
    "tpu.trace_stop"() : () -> ()
    %44 = vector.shape_cast %43 : vector<4x16x32xf32> to vector<1x4x16x32xf32>
    %cst_30 = arith.constant dense<0.000000e+00> : vector<1x16x32xf32>
    %45 = vector.multi_reduction <add>, %44, %cst_30 [1] : vector<1x4x16x32xf32> to vector<1x16x32xf32>
    %c0_31 = arith.constant 0 : index
    %c0_32 = arith.constant 0 : index
    %c0_33 = arith.constant 0 : index
    %46 = vector.load %arg1[%c0_31, %c0_32, %c0_33] : memref<1x16x32xf32, #tpu.memory_space<vmem>>, vector<1x16x32xf32>
    %47 = arith.addf %46, %45 : vector<1x16x32xf32>
    %c0_34 = arith.constant 0 : index
    %c0_35 = arith.constant 0 : index
    %48 = vector.load %arg8[%c0_34, %c0_35] : memref<1x32xf32, #tpu.memory_space<vmem>>, vector<1x32xf32>
    %49 = vector.shape_cast %48 : vector<1x32xf32> to vector<1x1x32xf32>
    %50 = vector.broadcast %49 : vector<1x1x32xf32> to vector<1x16x32xf32>
    %51 = arith.addf %47, %50 : vector<1x16x32xf32>
    %cst_36 = arith.constant dense<0.000000e+00> : vector<1x16xf32>
    %52 = vector.multi_reduction <add>, %51, %cst_36 [2] : vector<1x16x32xf32> to vector<1x16xf32>
    %53 = vector.shape_cast %52 : vector<1x16xf32> to vector<1x16x1xf32>
    %cst_37 = arith.constant 3.200000e+01 : f32
    %54 = vector.broadcast %cst_37 : f32 to vector<1x16x1xf32>
    %55 = arith.divf %53, %54 : vector<1x16x1xf32>
    %56 = vector.broadcast %55 : vector<1x16x1xf32> to vector<1x16x32xf32>
    %57 = arith.subf %51, %56 : vector<1x16x32xf32>
    %58 = arith.mulf %57, %57 : vector<1x16x32xf32>
    %cst_38 = arith.constant dense<0.000000e+00> : vector<1x16xf32>
    %59 = vector.multi_reduction <add>, %58, %cst_38 [2] : vector<1x16x32xf32> to vector<1x16xf32>
    %60 = vector.shape_cast %59 : vector<1x16xf32> to vector<1x16x1xf32>
    %cst_39 = arith.constant 3.200000e+01 : f32
    %61 = vector.broadcast %cst_39 : f32 to vector<1x16x1xf32>
    %62 = arith.divf %60, %61 : vector<1x16x1xf32>
    %cst_40 = arith.constant 9.99999974E-6 : f32
    %63 = vector.broadcast %cst_40 : f32 to vector<1x16x1xf32>
    %64 = arith.addf %62, %63 : vector<1x16x1xf32>
    %65 = math.rsqrt %64 : vector<1x16x1xf32>
    %66 = vector.broadcast %65 : vector<1x16x1xf32> to vector<1x16x32xf32>
    %67 = arith.mulf %57, %66 : vector<1x16x32xf32>
    %c0_41 = arith.constant 0 : index
    %c0_42 = arith.constant 0 : index
    %68 = vector.load %arg9[%c0_41, %c0_42] : memref<1x32xf32, #tpu.memory_space<vmem>>, vector<1x32xf32>
    %69 = vector.shape_cast %68 : vector<1x32xf32> to vector<1x1x32xf32>
    %70 = vector.broadcast %69 : vector<1x1x32xf32> to vector<1x16x32xf32>
    %71 = arith.mulf %67, %70 : vector<1x16x32xf32>
    %c0_43 = arith.constant 0 : index
    %c0_44 = arith.constant 0 : index
    %72 = vector.load %arg10[%c0_43, %c0_44] : memref<1x32xf32, #tpu.memory_space<vmem>>, vector<1x32xf32>
    %73 = vector.shape_cast %72 : vector<1x32xf32> to vector<1x1x32xf32>
    %74 = vector.broadcast %73 : vector<1x1x32xf32> to vector<1x16x32xf32>
    %75 = arith.addf %71, %74 : vector<1x16x32xf32>
    %c0_45 = arith.constant 0 : index
    %c0_46 = arith.constant 0 : index
    %c0_47 = arith.constant 0 : index
    %76 = vector.load %arg11[%c0_45, %c0_46, %c0_47] : memref<1x16x32xf32, #tpu.memory_space<vmem>>, vector<1x16x32xf32>
    tpu.vector_store %arg11[%c0_45, %c0_46, %c0_47], %75 {strides = array<i32>} : memref<1x16x32xf32, #tpu.memory_space<vmem>>, vector<1x16x32xf32>,
    return
  }
  func.func @transform_0(%arg0: i32) -> (i32, i32, i32) {
    %c0_i32 = arith.constant 0 : i32
    %c0_i32_0 = arith.constant 0 : i32
    %c0_i32_1 = arith.constant 0 : i32
    return %arg0, %c0_i32, %c0_i32_0 : i32, i32, i32
  }
  func.func @transform_1(%arg0: i32) -> (i32, i32, i32) {
    %c0_i32 = arith.constant 0 : i32
    %c0_i32_0 = arith.constant 0 : i32
    %c0_i32_1 = arith.constant 0 : i32
    return %arg0, %c0_i32, %c0_i32_0 : i32, i32, i32
  }
  func.func @transform_2(%arg0: i32) -> (i32, i32, i32) {
    %c0_i32 = arith.constant 0 : i32
    %c0_i32_0 = arith.constant 0 : i32
    %c0_i32_1 = arith.constant 0 : i32
    return %arg0, %c0_i32, %c0_i32_0 : i32, i32, i32
  }
  func.func @transform_3(%arg0: i32) -> (i32, i32, i32) {
    %c0_i32 = arith.constant 0 : i32
    %c0_i32_0 = arith.constant 0 : i32
    %c0_i32_1 = arith.constant 0 : i32
    %c0_i32_2 = arith.constant 0 : i32
    return %c0_i32, %c0_i32_0, %c0_i32_1 : i32, i32, i32
  }
  func.func @transform_4(%arg0: i32) -> (i32, i32, i32) {
    %c0_i32 = arith.constant 0 : i32
    %c0_i32_0 = arith.constant 0 : i32
    %c0_i32_1 = arith.constant 0 : i32
    %c0_i32_2 = arith.constant 0 : i32
    return %c0_i32, %c0_i32_0, %c0_i32_1 : i32, i32, i32
  }
  func.func @transform_5(%arg0: i32) -> (i32, i32, i32) {
    %c0_i32 = arith.constant 0 : i32
    %c0_i32_0 = arith.constant 0 : i32
    %c0_i32_1 = arith.constant 0 : i32
    %c0_i32_2 = arith.constant 0 : i32
    return %c0_i32, %c0_i32_0, %c0_i32_1 : i32, i32, i32
  }
  func.func @transform_6(%arg0: i32) -> (i32, i32, i32) {
    %c0_i32 = arith.constant 0 : i32
    %c0_i32_0 = arith.constant 0 : i32
    %c0_i32_1 = arith.constant 0 : i32
    %c0_i32_2 = arith.constant 0 : i32
    return %c0_i32, %c0_i32_0, %c0_i32_1 : i32, i32, i32
  }
  func.func @transform_7(%arg0: i32) -> (i32, i32) {
    %c0_i32 = arith.constant 0 : i32
    %c0_i32_0 = arith.constant 0 : i32
    %c0_i32_1 = arith.constant 0 : i32
    return %c0_i32, %c0_i32_0 : i32, i32
  }
  func.func @transform_8(%arg0: i32) -> (i32, i32) {
    %c0_i32 = arith.constant 0 : i32
    %c0_i32_0 = arith.constant 0 : i32
    %c0_i32_1 = arith.constant 0 : i32
    return %c0_i32, %c0_i32_0 : i32, i32
  }
  func.func @transform_9(%arg0: i32) -> (i32, i32) {
    %c0_i32 = arith.constant 0 : i32
    %c0_i32_0 = arith.constant 0 : i32
    %c0_i32_1 = arith.constant 0 : i32
    return %c0_i32, %c0_i32_0 : i32, i32
  }
  func.func @transform_10(%arg0: i32) -> (i32, i32, i32) {
    %c0_i32 = arith.constant 0 : i32
    %c0_i32_0 = arith.constant 0 : i32
    %c0_i32_1 = arith.constant 0 : i32
    return %arg0, %c0_i32, %c0_i32_0 : i32, i32, i32
  }
  func.func @transform_11(%arg0: i32) -> (i32, i32, i32) {
    %c0_i32 = arith.constant 0 : i32
    %c0_i32_0 = arith.constant 0 : i32
    %c0_i32_1 = arith.constant 0 : i32
    return %arg0, %c0_i32, %c0_i32_0 : i32, i32, i32
  }
}

</mosaic_0001>

<bundles_post_ra>
// kernel: tpu_custom_call.1
= control target key start
LH: loop header
LB: loop body
LE: loop exit
PB: predicated region body
PF: predicated region fallthrough
CT: control target
= control target key end

     0   :  { %s3844_s0 = inlined_call_operand.vmem [shape: f32[2,16,32], index: 0, kind: input, shape index: {}]   ;;  %s3845_s1 = inlined_call_operand.vmem [shape: f32[2,16,32], index: 1, kind: input, shape index: {}]   ;;  %s3846_s2 = inlined_call_operand.vmem [shape: f32[2,16,32], index: 2, kind: input, shape index: {}]   ;;  %s3847_s3 = inlined_call_operand.vmem [shape: f32[4,32,8], index: 3, kind: input, shape index: {}]   ;;  %s3848_s4 = inlined_call_operand.vmem [shape: f32[4,32,8], index: 4, kind: input, shape index: {}]   ;;  %s3849_s5 = inlined_call_operand.vmem [shape: f32[4,32,8], index: 5, kind: input, shape index: {}]   ;;  %s3850_s6 = inlined_call_operand.vmem [shape: f32[4,8,32], index: 6, kind: input, shape index: {}]   ;;  %s3851_s7 = inlined_call_operand.vmem [shape: f32[1,32], index: 7, kind: input, shape index: {}]   ;;  %s3852_s8 = inlined_call_operand.vmem [shape: f32[1,32], index: 8, kind: input, shape index: {}]   ;;  %s3853_s9 = inlined_call_operand.vmem [shape: f32[1,32], index: 9, kind: input, shape index: {}]   ;;  %s3854_s10 = inlined_call_operand.hbm [shape: f32[2,16,32], index: 10, kind: output, shape index: {0}]   ;;  %s3855_s11 = inlined_call_operand.hbm [shape: f32[8,16,16], index: 11, kind: output, shape index: {1}]  }
   0x1   :  { %3857 = sst [smem:[#allocation8_spill]] %s3844_s0 }
   0x2   :  { %3858 = sst [smem:[#allocation9_spill]] %s3847_s3 }
   0x3   :  { %17 = vsyncpa [#allocation3], 0 }
   0x4   :  { %19 = vsyncpa [#allocation3 + $0x1], 0 }
   0x5   :  { %20 = vsyncpa [#allocation5], 0 }
   0x6   :  { %22 = vsyncpa [#allocation5 + $0x1], 0  ;;  %s3384_s17 = smov 0   ;;  %s3386_s18 = smov 0  }
   0x7   :  { %s3388_s19 = smov 0   ;;  %s3390_s20 = smov 0  }
   0x8 LB: > { %s3405_s21 = sadd.s32 4294967295, %s3318_s20   ;;  %s2736_s22 = sadd.s32 4294967294, %s3318_s20   ;;  %s3318_s20 = sphi %s3390_s20, %s3868_s20   ;;  %s3314_s19 = sphi %s3388_s19, %s3867_s19   ;;  %s3310_s18 = sphi %s3386_s18, %s3866_s18   ;;  %s3306_s17 = sphi %s3384_s17, %s3865_s17  }
   0x9   : > { %s3409_s23 = sadd.s32 1, %s3318_s20   ;;  %s260_s24 = sadd.s32 1, %s3314_s19 }
   0xa   : > { %s257_s25 = ssub.s32 %s3318_s20, %s3409_s23  ;;  %p270_p0 = scmp.ne.s32.totalorder %s3314_s19, %s3310_s18 }
   0xb   : > { %p258_p1 = scmp.eq.s32.totalorder %s257_s25, 0  ;;  %p271_p2 = scmp.eq.s32.totalorder %s3405_s21, 1 }
   0xc   : > { %p276_p3 = scmp.ne.s32.totalorder %s3310_s18, %s3306_s17  ;;  %p277_p4 = scmp.eq.s32.totalorder %s2736_s22, 1 }
   0xd   : > { %s3420_s26 = scalar_select %p258_p1, %s3314_s19, %s260_s24  }
   0xe   : > { %p3422_p5 = por %p271_p2, %p270_p0  ;;  %p3426_p6 = por %p277_p4, %p276_p3 }
   0xf   : > { %p2739_p7 = scmp.ge.s32.totalorder %s3318_s20, 1  ;;  %p366_p8 = scmp.lt.s32.totalorder %s3318_s20, 3 }
  0x11   : > { %p367_p9 = pnand %p2739_p7, %p366_p8 }
  0x12   : > { %s3861_s3 = sld [smem:[#allocation9_spill]] (!%p367_p9)  ;;  %p421_p10 = scmp.lt.s32.totalorder (!%p367_p9), %s3405_s21, 1 }
  0x13   : > { %370 = sbr.rel (%p367_p9) target bundleno = 1497 (0x5d9), region = 60  ;;  %s3862_s0 = sld [smem:[#allocation8_spill]] (!%p367_p9) }
  0x14   : > { %s3679_s13 = sand.u32 (!%p367_p9), 1, %s3310_s18   ;;  %s3320_s30 = smov (!%p367_p9), [#allocation4]  }
  0x18   : > { %v442_v0 = vld [vmem:[%s3861_s3 + $0x18] sm:$0xff]  ;;  %v441_v2 = vld [vmem:[%s3861_s3 + $0x10] sm:$0xff]  ;;  %v440_v4 = vld [vmem:[%s3861_s3 + $0x8] sm:$0xff]  ;;  %s422_s12 = scalar_select %p421_p10, %s3405_s21, 1  ;;  %vm455_vm0 = vcmask 261120   ;;  %vm1410_vm1 = vcmask 64512  }
  0x19   : > { %v446_v1 = vld [vmem:[%s3861_s3 + $0x38] sm:$0xff]  ;;  %2938 = vmatprep.subr.mxu0 %v442_v0  ;;  %v445_v3 = vld [vmem:[%s3861_s3 + $0x30] sm:$0xff]  ;;  %v444_v5 = vld [vmem:[%s3861_s3 + $0x28] sm:$0xff]  ;;  %vm1759_vm2 = vcmask 130048  }
  0x1a   : > { %2949 = vmatprep.subr.mxu1 %v446_v1  ;;  %2939 = vmatpush3.msra.mxu0 %v442_v0  ;;  %v439_v6 = vld [vmem:[%s3861_s3] sm:$0xff]  ;;  %s3458_s22 = sshll.u32 %s422_s12, 4  ;;  %v450_v10 = vld [vmem:[%s3861_s3 + $0x58] sm:$0xff]  ;;  %v449_v12 = vld [vmem:[%s3861_s3 + $0x50] sm:$0xff]  ;;  %s2741_s12 = sshll.u32 %s3679_s13, 6 }
  0x1b   : > { %2950 = vmatpush3.msra.mxu1 %v446_v1  ;;  %2940 = vmatprep.subr.mxu0 %v441_v2  ;;  %v443_v7 = vld [vmem:[%s3861_s3 + $0x20] sm:$0xff]  ;;  %s425_s29 = scalar_lea.vmem %s3862_s0, %s3458_s22  ;;  %v454_v11 = vld [vmem:[%s3861_s3 + $0x78] sm:$0xff]  ;;  %v453_v13 = vld [vmem:[%s3861_s3 + $0x70] sm:$0xff]  ;;  %s430_s14 = scalar_lea.vmem %s3845_s1, %s3458_s22 }
  0x1c   : > { %2951 = vmatprep.subr.mxu1 %v445_v3  ;;  %2941 = vmatpush3.msra.mxu0 %v441_v2  ;;  %v3464_v8 = vld [vmem:[%s425_s29] sm:$0xff]  ;;  %v3466_v9 = vld [vmem:[%s425_s29 + $0x8] sm:$0xff]  ;;  %v767_v18 = vld [vmem:[%s3848_s4 + $0x18] sm:$0xff]  ;;  %s435_s0 = scalar_lea.vmem %s3846_s2, %s3458_s22 }
  0x1d   : > { %2952 = vmatpush3.msra.mxu1 %v445_v3  ;;  %2942 = vmatprep.subr.mxu0 %v440_v4  ;;  %v448_v14 = vld [vmem:[%s3861_s3 + $0x48] sm:$0xff]  ;;  %v447_v16 = vld [vmem:[%s3861_s3 + $0x40] sm:$0xff]  ;;  %v771_v19 = vld [vmem:[%s3848_s4 + $0x38] sm:$0xff] }
  0x1e   : > { %2953 = vmatprep.subr.mxu1 %v444_v5  ;;  %2943 = vmatpush3.msra.mxu0 %v440_v4  ;;  %v452_v15 = vld [vmem:[%s3861_s3 + $0x68] sm:$0xff]  ;;  %v451_v17 = vld [vmem:[%s3861_s3 + $0x60] sm:$0xff]  ;;  %v766_v20 = vld [vmem:[%s3848_s4 + $0x10] sm:$0xff]  ;;  %s3232_s3 = sshll.u32 %s3320_s30, 4  ;;  %s3233_s3 = int_to_ptr.vmem [resolvable:$false] %s3232_s3 }
  0x1f   : > { %2954 = vmatpush3.msra.mxu1 %v444_v5  ;;  %2944 = vmatprep.subr.mxu0 %v439_v6  ;;  %v770_v21 = vld [vmem:[%s3848_s4 + $0x30] sm:$0xff]  ;;  %v765_v22 = vld [vmem:[%s3848_s4 + $0x8] sm:$0xff]  ;;  %v764_v24 = vld [vmem:[%s3848_s4] sm:$0xff] }
  0x20   : > { %2955 = vmatprep.subr.mxu1 %v443_v7  ;;  %2945 = vmatpush3.msra.mxu0 %v439_v6  ;;  %v769_v23 = vld [vmem:[%s3848_s4 + $0x28] sm:$0xff]  ;;  %v768_v25 = vld [vmem:[%s3848_s4 + $0x20] sm:$0xff]  ;;  %v775_v28 = vld [vmem:[%s3848_s4 + $0x58] sm:$0xff] }
  0x21   : > { %2946 = vmatprep.mubr.msk.f32.mxu0 %vm455_vm0, %v3464_v8  ;;  %2956 = vmatpush3.msra.mxu1 %v443_v7  ;;  %v762_v26 = vld [vmem:[%s430_s14] sm:$0xff]  ;;  %v763_v27 = vld [vmem:[%s430_s14 + $0x8] sm:$0xff]  ;;  %v779_v29 = vld [vmem:[%s3848_s4 + $0x78] sm:$0xff]  ;;  %s2821_s14 = sshll.u32 %s3405_s21, 10 }
  0x22   : > { %2947 = vmatmul.mubr.msk.f32.vlgmr.msra.gmra.mxu0 %vm455_vm0, %v3466_v9  ;;  %2957 = vmatprep.mubr.msk.f32.mxu1 %vm455_vm0, %v3464_v8  ;;  %v774_v30 = vld [vmem:[%s3848_s4 + $0x50] sm:$0xff]  ;;  %v773_v32 = vld [vmem:[%s3848_s4 + $0x48] sm:$0xff]  ;;  %v772_v34 = vld [vmem:[%s3848_s4 + $0x40] sm:$0xff]  ;;  %s3755_s22 = scalar_lea.hbm %s3855_s11, %s2821_s14 }
  0x23   : > { %2960 = vmatprep.subr.mxu0 %v450_v10  ;;  %2971 = vmatprep.subr.mxu1 %v454_v11  ;;  %v778_v31 = vld [vmem:[%s3848_s4 + $0x70] sm:$0xff]  ;;  %v777_v33 = vld [vmem:[%s3848_s4 + $0x68] sm:$0xff]  ;;  %v776_v35 = vld [vmem:[%s3848_s4 + $0x60] sm:$0xff] }
  0x24   : > { %2958 = vmatmul.mubr.msk.f32.vlgmr.msra.gmra.mxu1 %vm455_vm0, %v3466_v9  ;;  %2961 = vmatpush3.msra.mxu0 %v450_v10  ;;  %v1091_v36 = vld [vmem:[%s3849_s5 + $0x18] sm:$0xff]  ;;  %v1090_v38 = vld [vmem:[%s3849_s5 + $0x10] sm:$0xff]  ;;  %v1089_v40 = vld [vmem:[%s3849_s5 + $0x8] sm:$0xff] }
  0x25   : > { %2972 = vmatpush3.msra.mxu1 %v454_v11  ;;  %2962 = vmatprep.subr.mxu0 %v449_v12  ;;  %v1095_v37 = vld [vmem:[%s3849_s5 + $0x38] sm:$0xff]  ;;  %v1094_v39 = vld [vmem:[%s3849_s5 + $0x30] sm:$0xff]  ;;  %v1093_v41 = vld [vmem:[%s3849_s5 + $0x28] sm:$0xff] }
  0x26   : > { %2973 = vmatprep.subr.mxu1 %v453_v13  ;;  %2963 = vmatpush3.msra.mxu0 %v449_v12  ;;  %v1086_v42 = vld [vmem:[%s435_s0] sm:$0xff]  ;;  %v1087_v45 = vld [vmem:[%s435_s0 + $0x8] sm:$0xff]  ;;  %v1099_v46 = vld [vmem:[%s3849_s5 + $0x58] sm:$0xff]  ;;  %s3682_s0 = scalar_lea.vmem [#allocation4], %s2741_s12  ;;  %s3234_s12 = scalar_lea.vmem %s3233_s3, 2048 }
  0x27   : > { %2974 = vmatpush3.msra.mxu1 %v453_v13  ;;  %2964 = vmatprep.subr.mxu0 %v448_v14  ;;  %v1088_v43 = vld [vmem:[%s3849_s5] sm:$0xff]  ;;  %v1098_v47 = vld [vmem:[%s3849_s5 + $0x50] sm:$0xff]  ;;  %v1103_v48 = vld [vmem:[%s3849_s5 + $0x78] sm:$0xff]  ;;  %s2618_s24 = sshll.u32 %s3682_s0, 4  ;;  %s3758_s24 = int_to_ptr.vmem [resolvable:$true] %s2618_s24 }
  0x28   : > { %2975 = vmatprep.subr.mxu1 %v452_v15  ;;  %2965 = vmatpush3.msra.mxu0 %v448_v14  ;;  %v1092_v44 = vld [vmem:[%s3849_s5 + $0x20] sm:$0xff]  ;;  %v1097_v49 = vld [vmem:[%s3849_s5 + $0x48] sm:$0xff]  ;;  %v1102_v50 = vld [vmem:[%s3849_s5 + $0x70] sm:$0xff]  ;;  %s3228_s29 = scalar_lea.vmem %s3758_s24, 1024  ;;  %p3235_p0 = scmp.lt.s32.totalorder %s3758_s24, %s3233_s3 }
  0x29   : > { %2976 = vmatpush3.msra.mxu1 %v452_v15  ;;  %2966 = vmatprep.subr.mxu0 %v447_v16  ;;  %v1096_v51 = vld [vmem:[%s3849_s5 + $0x40] sm:$0xff]  ;;  %v1101_v52 = vld [vmem:[%s3849_s5 + $0x68] sm:$0xff]  ;;  %p3229_p11 = scmp.ne.s32.totalorder %s3758_s24, %s3228_s29  ;;  %p3236_p1 = scmp.lt.s32.totalorder %s3234_s12, %s3228_s29 }
  0x2a   : > { %2977 = vmatprep.subr.mxu1 %v451_v17  ;;  %2967 = vmatpush3.msra.mxu0 %v447_v16  ;;  %v1100_v53 = vld [vmem:[%s3849_s5 + $0x60] sm:$0xff] }
  0x2b   : > { %2968 = vmatprep.mubr.msk.f32.mxu0 %vm455_vm0, %v3464_v8  ;;  %2978 = vmatpush3.msra.mxu1 %v451_v17  ;;  %p3230_p12 = pnand %p3229_p11, %p3422_p5  ;;  %p3237_p2 = por %p3236_p1, %p3235_p0 }
  0x2c   : > { %2969 = vmatmul.mubr.msk.f32.vlgmr.msra.gmra.mxu0 %vm455_vm0, %v3466_v9  ;;  %2979 = vmatprep.mubr.msk.f32.mxu1 %vm455_vm0, %v3464_v8 }
  0x2d   : > { %2982 = vmatprep.subr.mxu0 %v767_v18  ;;  %2993 = vmatprep.subr.mxu1 %v771_v19  ;;  %p3231_p13 = pneg %p3230_p12 }
  0x2e   : > { %2980 = vmatmul.mubr.msk.f32.vlgmr.msra.gmra.mxu1 %vm455_vm0, %v3466_v9  ;;  %2983 = vmatpush3.msra.mxu0 %v767_v18 }
  0x2f   : > { %2994 = vmatpush3.msra.mxu1 %v771_v19  ;;  %2984 = vmatprep.subr.mxu0 %v766_v20  ;;  %p3238_p3 = pnand %p3237_p2, %p3231_p13 }
  0x30   : > { %2995 = vmatprep.subr.mxu1 %v770_v21  ;;  %2985 = vmatpush3.msra.mxu0 %v766_v20 }
  0x31   : > { %2996 = vmatpush3.msra.mxu1 %v770_v21  ;;  %2986 = vmatprep.subr.mxu0 %v765_v22 }
  0x32   : > { %2997 = vmatprep.subr.mxu1 %v769_v23  ;;  %2987 = vmatpush3.msra.mxu0 %v765_v22 }
  0x33   : > { %2998 = vmatpush3.msra.mxu1 %v769_v23  ;;  %2988 = vmatprep.subr.mxu0 %v764_v24 }
  0x34   : > { %2999 = vmatprep.subr.mxu1 %v768_v25  ;;  %2989 = vmatpush3.msra.mxu0 %v764_v24 }
  0x35   : > { %2990 = vmatprep.mubr.msk.f32.mxu0 %vm455_vm0, %v762_v26  ;;  %3000 = vmatpush3.msra.mxu1 %v768_v25 }
  0x36   : > { %3001 = vmatprep.mubr.msk.f32.mxu1 %vm455_vm0, %v762_v26  ;;  %2991 = vmatmul.mubr.msk.f32.vlgmr.msra.gmra.mxu0 %vm455_vm0, %v763_v27 }
  0x37   : > { %3002 = vmatmul.mubr.msk.f32.vlgmr.msra.gmra.mxu1 %vm455_vm0, %v763_v27  ;;  %3004 = vmatprep.subr.mxu0 %v775_v28 }
  0x38   : > { %3015 = vmatprep.subr.mxu1 %v779_v29  ;;  %3005 = vmatpush3.msra.mxu0 %v775_v28 }
  0x39   : > { %3016 = vmatpush3.msra.mxu1 %v779_v29  ;;  %3006 = vmatprep.subr.mxu0 %v774_v30 }
  0x3a   : > { %3017 = vmatprep.subr.mxu1 %v778_v31  ;;  %3007 = vmatpush3.msra.mxu0 %v774_v30 }
  0x3b   : > { %3018 = vmatpush3.msra.mxu1 %v778_v31  ;;  %3008 = vmatprep.subr.mxu0 %v773_v32 }
  0x3c   : > { %3019 = vmatprep.subr.mxu1 %v777_v33  ;;  %3009 = vmatpush3.msra.mxu0 %v773_v32 }
  0x3d   : > { %3020 = vmatpush3.msra.mxu1 %v777_v33  ;;  %3010 = vmatprep.subr.mxu0 %v772_v34 }
  0x3e   : > { %3021 = vmatprep.subr.mxu1 %v776_v35  ;;  %3011 = vmatpush3.msra.mxu0 %v772_v34 }
  0x3f   : > { %3012 = vmatprep.mubr.msk.f32.mxu0 %vm455_vm0, %v762_v26  ;;  %3022 = vmatpush3.msra.mxu1 %v776_v35 }
  0x40   : > { %3023 = vmatprep.mubr.msk.f32.mxu1 %vm455_vm0, %v762_v26  ;;  %3013 = vmatmul.mubr.msk.f32.vlgmr.msra.gmra.mxu0 %vm455_vm0, %v763_v27 }
  0x41   : > { %3024 = vmatmul.mubr.msk.f32.vlgmr.msra.gmra.mxu1 %vm455_vm0, %v763_v27  ;;  %3026 = vmatprep.subr.mxu0 %v1091_v36 }
  0x42   : > { %3037 = vmatprep.subr.mxu1 %v1095_v37  ;;  %3027 = vmatpush3.msra.mxu0 %v1091_v36 }
  0x43   : > { %3038 = vmatpush3.msra.mxu1 %v1095_v37  ;;  %3028 = vmatprep.subr.mxu0 %v1090_v38 }
  0x44   : > { %3039 = vmatprep.subr.mxu1 %v1094_v39  ;;  %3029 = vmatpush3.msra.mxu0 %v1090_v38 }
  0x45   : > { %3040 = vmatpush3.msra.mxu1 %v1094_v39  ;;  %3030 = vmatprep.subr.mxu0 %v1089_v40 }
  0x46   : > { %3041 = vmatprep.subr.mxu1 %v1093_v41  ;;  %3031 = vmatpush3.msra.mxu0 %v1089_v40 }
  0x47   : > { %3034 = vmatprep.mubr.msk.f32.mxu0 %vm455_vm0, %v1086_v42  ;;  %3032 = vmatprep.subr.mxu0 %v1088_v43 }
  0x48   : > { %3042 = vmatpush3.msra.mxu1 %v1093_v41  ;;  %3033 = vmatpush3.msra.mxu0 %v1088_v43 }
  0x49   : > { %3043 = vmatprep.subr.mxu1 %v1092_v44  ;;  %3048 = vmatprep.subr.mxu0 %v1099_v46 }
  0x4a   : > { %3035 = vmatmul.mubr.msk.f32.vlgmr.msra.gmra.mxu0 %vm455_vm0, %v1087_v45  ;;  %3044 = vmatpush3.msra.mxu1 %v1092_v44 }
  0x4b   : > { %3049 = vmatpush3.msra.mxu0 %v1099_v46  ;;  %3045 = vmatprep.mubr.msk.f32.mxu1 %vm455_vm0, %v1086_v42 }
  0x4c   : > { %3050 = vmatprep.subr.mxu0 %v1098_v47  ;;  %3059 = vmatprep.subr.mxu1 %v1103_v48 }
  0x4d   : > { %3051 = vmatpush3.msra.mxu0 %v1098_v47  ;;  %3046 = vmatmul.mubr.msk.f32.vlgmr.msra.gmra.mxu1 %vm455_vm0, %v1087_v45 }
  0x4e   : > { %3052 = vmatprep.subr.mxu0 %v1097_v49  ;;  %3060 = vmatpush3.msra.mxu1 %v1103_v48 }
  0x4f   : > { %3053 = vmatpush3.msra.mxu0 %v1097_v49  ;;  %3061 = vmatprep.subr.mxu1 %v1102_v50 }
  0x50   : > { %3056 = vmatprep.mubr.msk.f32.mxu0 %vm455_vm0, %v1086_v42  ;;  %3062 = vmatpush3.msra.mxu1 %v1102_v50 }
  0x51   : > { %3067 = vmatprep.mubr.msk.f32.mxu1 %vm455_vm0, %v1086_v42  ;;  %3054 = vmatprep.subr.mxu0 %v1096_v51 }
  0x52   : > { %3063 = vmatprep.subr.mxu1 %v1101_v52  ;;  %3055 = vmatpush3.msra.mxu0 %v1096_v51 }
  0x53   : > { %3064 = vmatpush3.msra.mxu1 %v1101_v52  ;;  %3057 = vmatmul.mubr.msk.f32.vlgmr.msra.gmra.mxu0 %vm455_vm0, %v1087_v45 }
  0x54   : > { %3065 = vmatprep.subr.mxu1 %v1100_v53 }
  0x55   : > { %3066 = vmatpush3.msra.mxu1 %v1100_v53 }
  0x56   : > { %3068 = vmatmul.mubr.msk.f32.vlgmr.msra.gmra.mxu1 %vm455_vm0, %v1087_v45 }
  0xe2   : > { %v2948_v54 = vpop.f32.mrf.mxu0 }
  0xe4   : > { %v528_v55 = vpop.f32.mrf.mxu0  ;;  %v2959_v56 = vpop.f32.mrf.mxu1 }
  0xe5   : > { %3074 = vmatprep.mubr.msk.f32.mxu0 %vm1410_vm1, %v528_v55 }
  0xe6   : > { %v603_v57 = vpop.f32.mrf.mxu1 }
  0xe7   : > { %3081 = vmatprep.mubr.msk.f32.mxu1 %vm1410_vm1, %v603_v57 }
  0xec   : > { %v2970_v59 = vpop.f32.mrf.mxu0 }
  0xee   : > { %v2981_v58 = vpop.f32.mrf.mxu1  ;;  %v678_v61 = vpop.f32.mrf.mxu0 }
  0xf0   : > { %v753_v60 = vpop.f32.mrf.mxu1 }
  0xf6   : > { %v2992_v62 = vpop.f32.mrf.mxu0 }
  0xf7   : > { %v3003_v63 = vpop.f32.mrf.mxu1  ;;  %3070 = vmatprep.subr.msk.mxu0 %vm1410_vm1, %v2992_v62 }
  0xf8   : > { %3077 = vmatprep.subr.msk.mxu1 %vm1410_vm1, %v3003_v63  ;;  %v852_v0 = vpop.f32.mrf.mxu0  ;;  %3071 = vmatpush3.xpose.msk.msra.mxu0 %vm1410_vm1, %v2992_v62 }
  0xf9   : > { %3078 = vmatpush3.xpose.msk.msra.mxu1 %vm1410_vm1, %v3003_v63  ;;  %v927_v1 = vpop.f32.mrf.mxu1  ;;  %3072 = vmatprep.subr.msk.mxu0 %vm1410_vm1, %v852_v0 }
  0xfa   : > { %3079 = vmatprep.subr.msk.mxu1 %vm1410_vm1, %v927_v1 }
  0xfc   : > { %3073 = vmatpush3.xpose.msk.msra.mxu0 %vm1410_vm1, %v852_v0 }
  0xfd   : > { %3080 = vmatpush3.xpose.msk.msra.mxu1 %vm1410_vm1, %v927_v1 }
  0xff   : > { %3075 = vmatmul.mubr.msk.f32.vlgmr.msra.gmra.mxu0 %vm1410_vm1, %v2948_v54 }
 0x100   : > { %3082 = vmatmul.mubr.msk.f32.vlgmr.msra.gmra.mxu1 %vm1410_vm1, %v2959_v56  ;;  %v3014_v2 = vpop.f32.mrf.mxu0  ;;  %3088 = vmatprep.mubr.msk.f32.mxu0 %vm1410_vm1, %v678_v61 }
 0x101   : > { %v3025_v3 = vpop.f32.mrf.mxu1  ;;  %3095 = vmatprep.mubr.msk.f32.mxu1 %vm1410_vm1, %v753_v60  ;;  %3084 = vmatprep.subr.msk.mxu0 %vm1410_vm1, %v3014_v2 }
 0x102   : > { %3091 = vmatprep.subr.msk.mxu1 %vm1410_vm1, %v3025_v3  ;;  %v1002_v4 = vpop.f32.mrf.mxu0  ;;  %3085 = vmatpush3.xpose.msk.msra.mxu0 %vm1410_vm1, %v3014_v2 }
 0x103   : > { %3092 = vmatpush3.xpose.msk.msra.mxu1 %vm1410_vm1, %v3025_v3  ;;  %v1077_v5 = vpop.f32.mrf.mxu1  ;;  %3086 = vmatprep.subr.msk.mxu0 %vm1410_vm1, %v1002_v4 }
 0x104   : > { %3093 = vmatprep.subr.msk.mxu1 %vm1410_vm1, %v1077_v5 }
 0x106   : > { %3087 = vmatpush3.xpose.msk.msra.mxu0 %vm1410_vm1, %v1002_v4 }
 0x107   : > { %3094 = vmatpush3.xpose.msk.msra.mxu1 %vm1410_vm1, %v1077_v5 }
 0x109   : > { %3089 = vmatmul.mubr.msk.f32.vlgmr.msra.gmra.mxu0 %vm1410_vm1, %v2970_v59 }
 0x10a   : > { %3096 = vmatmul.mubr.msk.f32.vlgmr.msra.gmra.mxu1 %vm1410_vm1, %v2981_v58  ;;  %v3036_v6 = vpop.f32.mrf.mxu0 }
 0x10b   : > { %3098 = vmatprep.subr.mxu0 %v3036_v6 }
 0x10c   : > { %v1176_v7 = vpop.f32.mrf.mxu0  ;;  %3099 = vmatpush3.msra.mxu0 %v3036_v6 }
 0x10d   : > { %3100 = vmatprep.subr.mxu0 %v1176_v7  ;;  %v3047_v10 = vpop.f32.mrf.mxu1 }
 0x10e   : > { %3101 = vmatpush3.msra.mxu0 %v1176_v7  ;;  %3105 = vmatprep.subr.mxu1 %v3047_v10 }
 0x10f   : > { %v1251_v11 = vpop.f32.mrf.mxu1  ;;  %3106 = vmatpush3.msra.mxu1 %v3047_v10 }
 0x110   : > { %3107 = vmatprep.subr.mxu1 %v1251_v11 }
 0x111   : > { %3108 = vmatpush3.msra.mxu1 %v1251_v11 }
 0x113   : > { %v3652_v12 = vpop.f32.mrf.mxu0 }
 0x114   : > { %3112 = vmatprep.subr.mxu0 %v3652_v12 }
 0x115   : > { %v3660_v15 = vpop.f32.mrf.mxu0 }
 0x116   : > { %v3655_v13 = vpop.f32.mrf.mxu1 }
 0x117   : > { %3119 = vmatprep.subr.mxu1 %v3655_v13 }
 0x118   : > { %v3658_v14 = vpop.f32.mrf.mxu1 }
 0x1bf   : > { %v3076_v16 = vpop.f32.mrf.mxu0 }
 0x1c0   : > { %v3083_v17 = vpop.f32.mrf.mxu1  ;;  %v1763_v19 = vsel %vm1759_vm2, %v3076_v16, -inf }
 0x1c1   : > { %v1769_v18 = vsel %vm1759_vm2, %v3083_v17, -inf  ;;  %1764 = vmax.xlane.f32.xlu0 %v1763_v19  ;;  %v1489_v21 = vpop.f32.mrf.mxu0 }
 0x1c2   : > { %1770 = vmax.xlane.f32.xlu1 %v1769_v18  ;;  %v1576_v20 = vpop.f32.mrf.mxu1  ;;  %v1760_v23 = vsel %vm1759_vm2, %v1489_v21, -inf }
 0x1c3   : > { %v1766_v22 = vsel %vm1759_vm2, %v1576_v20, -inf }
 0x1c5   : > { %1761 = vmax.xlane.f32.xlu0 %v1760_v23 }
 0x1c6   : > { %1767 = vmax.xlane.f32.xlu1 %v1766_v22 }
 0x1c9   : > { %v3090_v24 = vpop.f32.mrf.mxu0 }
 0x1ca   : > { %v3097_v25 = vpop.f32.mrf.mxu1  ;;  %v1775_v26 = vsel %vm1759_vm2, %v3090_v24, -inf }
 0x1cb   : > { %1776 = vmax.xlane.f32.xlu1 %v1775_v26  ;;  %v1663_v27 = vpop.f32.mrf.mxu0  ;;  %v1781_v30 = vsel %vm1759_vm2, %v3097_v25, -inf }
 0x1cc   : > { %v1772_v28 = vsel %vm1759_vm2, %v1663_v27, -inf  ;;  %v1750_v29 = vpop.f32.mrf.mxu1 }
 0x1cd   : > { %1773 = vmax.xlane.f32.xlu0 %v1772_v28  ;;  %v1778_v31 = vsel %vm1759_vm2, %v1750_v29, -inf }
 0x1cf   : > { %1782 = vmax.xlane.f32.xlu1 %v1781_v30 }
 0x1d1   : > { %1779 = vmax.xlane.f32.xlu0 %v1778_v31 }
 0x24a   : > { %v1765_v33 = vpop.xlane.xlu0 %1764 }
 0x24b   : > { %v1771_v32 = vpop.xlane.xlu1 %1770  ;;  %v1785_v35 = vsub.f32 %v3076_v16, %v1765_v33 }
 0x24c   : > { %v1787_v34 = vsub.f32 %v3083_v17, %v1771_v32 }
 0x24d   : > { %v1794_v36 = vmul.f32 1.442695, %v1785_v35 }
 0x24e   : > { %v1798_v37 = vmul.f32 1.442695, %v1787_v34  ;;  %v1762_v39 = vpop.xlane.xlu0 %1761 }
 0x24f   : > { %v1768_v38 = vpop.xlane.xlu1 %1767  ;;  %v1784_v41 = vsub.f32 %v1489_v21, %v1762_v39  ;;  %3192 = vpow2.f32 %v1794_v36  ;;  %v2182_v36 = vld [vmem:[%s3850_s6 + $0x10] sm:$0xff] }
 0x250   : > { %v1786_v40 = vsub.f32 %v1576_v20, %v1768_v38  ;;  %3194 = vpow2.f32 %v1798_v37  ;;  %v2183_v37 = vld [vmem:[%s3850_s6 + $0x18] sm:$0xff] }
 0x251   : > { %v1792_v42 = vmul.f32 1.442695, %v1784_v41 }
 0x252   : > { %v1796_v43 = vmul.f32 1.442695, %v1786_v40 }
 0x253   : > { %3196 = vpow2.f32 %v1792_v42 }
 0x254   : > { %v1777_v44 = vpop.xlane.xlu1 %1776  ;;  %3198 = vpow2.f32 %v1796_v43 }
 0x255   : > { %v1789_v45 = vsub.f32 %v3090_v24, %v1777_v44 }
 0x256   : > { %v1774_v46 = vpop.xlane.xlu0 %1773 }
 0x257   : > { %v1802_v47 = vmul.f32 1.442695, %v1789_v45  ;;  %v1788_v48 = vsub.f32 %v1663_v27, %v1774_v46 }
 0x258   : > { %v1783_v49 = vpop.xlane.xlu1 %1782 }
 0x259   : > { %3200 = vpow2.f32 %v1802_v47  ;;  %v1800_v50 = vmul.f32 1.442695, %v1788_v48  ;;  %v1791_v51 = vsub.f32 %v3097_v25, %v1783_v49 }
 0x25a   : > { %v1780_v52 = vpop.xlane.xlu0 %1779 }
 0x25b   : > { %3202 = vpow2.f32 %v1800_v50  ;;  %v1806_v53 = vmul.f32 1.442695, %v1791_v51  ;;  %v1790_v54 = vsub.f32 %v1750_v29, %v1780_v52 }
 0x25c   : > { %v3193_v55 = vpop.eup %3192 }
 0x25d   : > { %3204 = vpow2.f32 %v1806_v53  ;;  %v1804_v56 = vmul.f32 1.442695, %v1790_v54  ;;  %v1811_v57 = vsel %vm1759_vm2, %v3193_v55, 0.0  ;;  %v3195_v58 = vpop.eup %3194 }
 0x25e   : > { %1812 = vadd.xlane.f32.xlu1 %v1811_v57  ;;  %v1817_v60 = vsel %vm1759_vm2, %v3195_v58, 0.0 }
 0x25f   : > { %3206 = vpow2.f32 %v1804_v56 }
 0x260   : > { %v3197_v59 = vpop.eup %3196 }
 0x261   : > { %v1808_v61 = vsel %vm1759_vm2, %v3197_v59, 0.0  ;;  %v3199_v62 = vpop.eup %3198 }
 0x262   : > { %1818 = vadd.xlane.f32.xlu1 %v1817_v60  ;;  %1809 = vadd.xlane.f32.xlu0 %v1808_v61  ;;  %v1814_v0 = vsel %vm1759_vm2, %v3199_v62, 0.0 }
 0x266   : > { %v3201_v63 = vpop.eup %3200  ;;  %1815 = vadd.xlane.f32.xlu0 %v1814_v0 }
 0x267   : > { %v1823_v1 = vsel %vm1759_vm2, %v3201_v63, 0.0 }
 0x268   : > { %v3203_v2 = vpop.eup %3202  ;;  %1824 = vadd.xlane.f32.xlu1 %v1823_v1 }
 0x269   : > { %v1820_v4 = vsel %vm1759_vm2, %v3203_v2, 0.0 }
 0x26a   : > { %v3205_v3 = vpop.eup %3204  ;;  %1821 = vadd.xlane.f32.xlu0 %v1820_v4 }
 0x26b   : > { %v1829_v5 = vsel %vm1759_vm2, %v3205_v3, 0.0 }
 0x26c   : > { %v3207_v6 = vpop.eup %3206  ;;  %1830 = vadd.xlane.f32.xlu1 %v1829_v5 }
 0x26d   : > { %v1826_v7 = vsel %vm1759_vm2, %v3207_v6, 0.0 }
 0x26e   : > { %1827 = vadd.xlane.f32.xlu0 %v1826_v7 }
 0x2e7   : > { %v1813_v10 = vpop.xlane.xlu1 %1812 }
 0x2e8   : > { %3208 = vrcp.f32 %v1813_v10 }
 0x2eb   : > { %v1819_v11 = vpop.xlane.xlu1 %1818  ;;  %v1810_v16 = vpop.xlane.xlu0 %1809 }
 0x2ec   : > { %3210 = vrcp.f32 %v1819_v11 }
 0x2ed   : > { %3212 = vrcp.f32 %v1810_v16 }
 0x2ef   : > { %v1816_v17 = vpop.xlane.xlu0 %1815 }
 0x2f0   : > { %3214 = vrcp.f32 %v1816_v17 }
 0x2f1   : > { %v1825_v18 = vpop.xlane.xlu1 %1824 }
 0x2f2   : > { %3216 = vrcp.f32 %v1825_v18 }
 0x2f3   : > { %v1822_v19 = vpop.xlane.xlu0 %1821 }
 0x2f4   : > { %3218 = vrcp.f32 %v1822_v19 }
 0x2f5   : > { %v1831_v20 = vpop.xlane.xlu1 %1830  ;;  %v3209_v21 = vpop.eup %3208 }
 0x2f6   : > { %3220 = vrcp.f32 %v1831_v20  ;;  %v1841_v22 = vmul.f32 %v3209_v21, %v3193_v55 }
 0x2f7   : > { %v1828_v23 = vpop.xlane.xlu0 %1827 }
 0x2f8   : > { %3222 = vrcp.f32 %v1828_v23  ;;  %1849 = vst.msk [vmem:[%s3682_s0 + $0x8] sm:$0xff] %vm1759_vm2, %v1841_v22 }
 0x2f9   : > { %v3211_v24 = vpop.eup %3210 }
 0x2fa   : > { %v3213_v25 = vpop.eup %3212  ;;  %v1843_v26 = vmul.f32 %v3211_v24, %v3195_v58 }
 0x2fb   : > { %v1840_v27 = vmul.f32 %v3213_v25, %v3197_v59 }
 0x2fc   : > { %1851 = vst.msk [vmem:[%s3682_s0 + $0x18] sm:$0xff] %vm1759_vm2, %v1843_v26 }
 0x2fd   : > { %v3215_v28 = vpop.eup %3214  ;;  %1848 = vst.msk [vmem:[%s3682_s0] sm:$0xff] %vm1759_vm2, %v1840_v27  ;;  %3102 = vmatprep.mubr.msk.f32.mxu0 %vm1759_vm2, %v1840_v27 }
 0x2fe   : > { %3103 = vmatmul.mubr.msk.f32.vlgmr.msra.gmra.mxu0 %vm1759_vm2, %v1841_v22  ;;  %v1842_v30 = vmul.f32 %v3215_v28, %v3199_v62 }
 0x2ff   : > { %v3217_v29 = vpop.eup %3216  ;;  %3113 = vmatpush3.msra.mxu0 %v3652_v12 }
 0x300   : > { %v1845_v31 = vmul.f32 %v3217_v29, %v3201_v63  ;;  %3114 = vmatprep.subr.mxu0 %v3660_v15  ;;  %1850 = vst.msk [vmem:[%s3682_s0 + $0x10] sm:$0xff] %vm1759_vm2, %v1842_v30  ;;  %3109 = vmatprep.mubr.msk.f32.mxu1 %vm1759_vm2, %v1842_v30 }
 0x301   : > { %v3219_v32 = vpop.eup %3218  ;;  %3115 = vmatpush3.msra.mxu0 %v3660_v15  ;;  %3110 = vmatmul.mubr.msk.f32.vlgmr.msra.gmra.mxu1 %vm1759_vm2, %v1843_v26 }
 0x302   : > { %1853 = vst.msk [vmem:[%s3682_s0 + $0x28] sm:$0xff] %vm1759_vm2, %v1845_v31  ;;  %3120 = vmatpush3.msra.mxu1 %v3655_v13  ;;  %v1844_v12 = vmul.f32 %v3219_v32, %v3203_v2  ;;  %v2180_v13 = vld [vmem:[%s3850_s6] sm:$0xff] }
 0x303   : > { %v3221_v33 = vpop.eup %3220  ;;  %3121 = vmatprep.subr.mxu1 %v3658_v14  ;;  %3126 = vmatprep.subr.mxu0 %v2180_v13 }
 0x304   : > { %v1847_v34 = vmul.f32 %v3221_v33, %v3205_v3  ;;  %3122 = vmatpush3.msra.mxu1 %v3658_v14  ;;  %1852 = vst.msk [vmem:[%s3682_s0 + $0x20] sm:$0xff] %vm1759_vm2, %v1844_v12  ;;  %3116 = vmatprep.mubr.msk.f32.mxu0 %vm1759_vm2, %v1844_v12  ;;  %v2181_v14 = vld [vmem:[%s3850_s6 + $0x8] sm:$0xff]  ;;  %v2804_v3 = vld [vmem:[%s3851_s7] ss:$0 sm:$0xff] }
 0x305   : > { %v3223_v35 = vpop.eup %3222  ;;  %3117 = vmatmul.mubr.msk.f32.vlgmr.msra.gmra.mxu0 %vm1759_vm2, %v1845_v31  ;;  %3131 = vmatprep.subr.mxu1 %v2181_v14 }
 0x306   : > { %1855 = vst.msk [vmem:[%s3682_s0 + $0x38] sm:$0xff] %vm1759_vm2, %v1847_v34  ;;  %v1846_v15 = vmul.f32 %v3223_v35, %v3207_v6  ;;  %3127 = vmatpush3.msra.mxu0 %v2180_v13 }
 0x307   : > { %3136 = vmatprep.subr.mxu0 %v2182_v36 }
 0x308   : > { %1854 = vst.msk [vmem:[%s3682_s0 + $0x30] sm:$0xff] %vm1759_vm2, %v1846_v15  ;;  %3123 = vmatprep.mubr.msk.f32.mxu1 %vm1759_vm2, %v1846_v15 }
 0x309   : > { %3124 = vmatmul.mubr.msk.f32.vlgmr.msra.gmra.mxu1 %vm1759_vm2, %v1847_v34 }
 0x30a   : > { %3132 = vmatpush3.msra.mxu1 %v2181_v14 }
 0x30b   : > { %3141 = vmatprep.subr.mxu1 %v2183_v37 }
 0x3be   : > { %v3104_v38 = vpop.f32.mrf.mxu0 }
 0x3c0   : > { %v1928_v39 = vpop.f32.mrf.mxu0 }
 0x3c1   : > { %3128 = vmatprep.mubr.msk.f32.mxu0 %vm1410_vm1, %v1928_v39  ;;  %v3111_v40 = vpop.f32.mrf.mxu1 }
 0x3c2   : > { %3129 = vmatmul.mubr.msk.f32.vlgmr.msra.gmra.mxu0 %vm1410_vm1, %v3104_v38 }
 0x3c3   : > { %v2009_v41 = vpop.f32.mrf.mxu1  ;;  %3137 = vmatpush3.msra.mxu0 %v2182_v36 }
 0x3c4   : > { %3133 = vmatprep.mubr.msk.f32.mxu1 %vm1410_vm1, %v2009_v41 }
 0x3c5   : > { %v3118_v42 = vpop.f32.mrf.mxu0  ;;  %3134 = vmatmul.mubr.msk.f32.vlgmr.msra.gmra.mxu1 %vm1410_vm1, %v3111_v40 }
 0x3c6   : > { %3142 = vmatpush3.msra.mxu1 %v2183_v37 }
 0x3c7   : > { %v2090_v43 = vpop.f32.mrf.mxu0 }
 0x3c8   : > { %3138 = vmatprep.mubr.msk.f32.mxu0 %vm1410_vm1, %v2090_v43 }
 0x3c9   : > { %v3125_v44 = vpop.f32.mrf.mxu1  ;;  %3139 = vmatmul.mubr.msk.f32.vlgmr.msra.gmra.mxu0 %vm1410_vm1, %v3118_v42 }
 0x3cb   : > { %v2171_v45 = vpop.f32.mrf.mxu1 }
 0x3cc   : > { %3143 = vmatprep.mubr.msk.f32.mxu1 %vm1410_vm1, %v2171_v45 }
 0x3cd   : > { %3144 = vmatmul.mubr.msk.f32.vlgmr.msra.gmra.mxu1 %vm1410_vm1, %v3125_v44 }
 0x482   : > { %v3130_v46 = vpop.f32.mrf.mxu0 }
 0x483   : > { %v2515_v52 = vsel %vm455_vm0, %v3130_v46, 0.0 }
 0x484   : > { %v2256_v48 = vpop.f32.mrf.mxu0 }
 0x485   : > { %v3135_v47 = vpop.f32.mrf.mxu1  ;;  %v2508_v57 = vsel %vm455_vm0, %v2256_v48, 0.0 }
 0x486   : > { %v2516_v50 = vsel %vm455_vm0, %v3135_v47, 0.0 }
 0x487   : > { %v2337_v49 = vpop.f32.mrf.mxu1  ;;  %v2517_v55 = vadd.f32 %v2516_v50, %v2515_v52 }
 0x488   : > { %v2509_v53 = vsel %vm455_vm0, %v2337_v49, 0.0 }
 0x489   : > { %v3140_v51 = vpop.f32.mrf.mxu0  ;;  %v2510_v59 = vadd.f32 %v2509_v53, %v2508_v57 }
 0x48a   : > { %v2518_v54 = vsel %vm455_vm0, %v3140_v51, 0.0 }
 0x48b   : > { %v2418_v56 = vpop.f32.mrf.mxu0  ;;  %v2519_v60 = vadd.f32 %v2518_v54, %v2517_v55 }
 0x48c   : > { %v2511_v58 = vsel %vm455_vm0, %v2418_v56, 0.0 }
 0x48d   : > { %v3145_v61 = vpop.f32.mrf.mxu1  ;;  %v2512_v63 = vadd.f32 %v2511_v58, %v2510_v59 }
 0x48e   : > { %v2520_v62 = vsel %vm455_vm0, %v3145_v61, 0.0 }
 0x48f   : > { %v2521_v0 = vadd.f32 %v2520_v62, %v2519_v60  ;;  %v2499_v1 = vpop.f32.mrf.mxu1 }
 0x490   : > { %v2513_v2 = vsel %vm455_vm0, %v2499_v1, 0.0 }
 0x491   : > { %v2525_v4 = vadd.f32 %v2521_v0, %v3466_v9  ;;  %v2514_v5 = vadd.f32 %v2513_v2, %v2512_v63 }
 0x493   : > { %v2524_v6 = vadd.f32 %v2514_v5, %v3464_v8  ;;  %v2534_v7 = vadd.f32 %v2804_v3, %v2525_v4 }
 0x495   : > { %v2538_v10 = vsel %vm455_vm0, %v2534_v7, 0.0  ;;  %v2533_v11 = vadd.f32 %v2804_v3, %v2524_v6 }
 0x496   : > { %2539 = vadd.xlane.f32.xlu1 %v2538_v10 }
 0x497   : > { %v2535_v16 = vsel %vm455_vm0, %v2533_v11, 0.0 }
 0x498   : > { %2536 = vadd.xlane.f32.xlu0 %v2535_v16 }
 0x51f   : > { %v2540_v17 = vpop.xlane.xlu1 %2539 }
 0x520   : > { %v2543_v18 = vmul.f32 0.03125, %v2540_v17 }
 0x521   : > { %v2537_v19 = vpop.xlane.xlu0 %2536 }
 0x522   : > { %v2545_v20 = vsub.f32 %v2534_v7, %v2543_v18  ;;  %v2542_v9 = vmul.f32 0.03125, %v2537_v19 }
 0x524   : > { %v2544_v21 = vsub.f32 %v2533_v11, %v2542_v9  ;;  %v2547_v22 = vmul.f32 %v2545_v20, %v2545_v20 }
 0x526   : > { %v2551_v8 = vsel %vm455_vm0, %v2547_v22, 0.0  ;;  %v2546_v23 = vmul.f32 %v2544_v21, %v2544_v21 }
 0x527   : > { %2552 = vadd.xlane.f32.xlu1 %v2551_v8 }
 0x528   : > { %v2548_v24 = vsel %vm455_vm0, %v2546_v23, 0.0 }
 0x529   : > { %2549 = vadd.xlane.f32.xlu0 %v2548_v24 }
 0x52a   : > { %3241 = shalt.err (!%p3238_p3)
}
 0x52b   : > { %s3242_s0 = scalar_lea.hbm %s3755_s22, 1024  ;;  %s3246_s16 = scalar_lea.hbm %s3855_s11, 2048 }
 0x52c   : > { %p3243_p4 = scmp.ne.s32.totalorder %s3755_s22, %s3242_s0  ;;  %p3247_p9 = scmp.lt.s32.totalorder %s3755_s22, %s3855_s11 }
 0x52d   : > { %p3248_p10 = scmp.lt.s32.totalorder %s3246_s16, %s3242_s0 }
 0x52e   : > { %p3244_p7 = pnand %p3243_p4, %p3422_p5 }
 0x52f   : > { %p3249_p11 = por %p3248_p10, %p3247_p9 }
 0x530   : > { %p3245_p8 = pneg %p3244_p7 }
 0x532   : > { %p3250_p12 = pnand %p3249_p11, %p3245_p8 }
 0x534   : > { %3253 = shalt.err (!%p3250_p12)
}
 0x535   : > { %s3856_s29 = smov 128   ;;  %s3322_s3 = smov 8   ;;  %v2805_v32 = vld [vmem:[%s3852_s8] ss:$0 sm:$0xff] }
 0x536   : > { %s3863_s12 = scalar_lea.sflag [#allocation5], %s3679_s13  ;;  %s2740_s25 = sshll.u32 %s3679_s13, 4  ;;  %v2806_v34 = vld [vmem:[%s3853_s9] ss:$0 sm:$0xff] }
 0x537   : > { %3147 = dma.vmem_to_hbm [thread:$0]  (%p3422_p5), %s3758_s24, 1024, %s3755_s22, %s3863_s12, %s3856_s29, %s3856_s29, %s3322_s3  }
 0x538   : > { %s2819_s24 = sshll.u32 %s3405_s21, 8  ;;  %s413_s16 = scalar_lea.vmem [#allocation2], %s2740_s25 }
 0x539   : > { %s2601_s30 = sshll.u32 %s413_s16, 4  ;;  %s3798_s14 = scalar_lea.hbm %s3854_s10, %s2819_s24  ;;  %s3800_s30 = int_to_ptr.vmem [resolvable:$true] %s2601_s30 }
 0x53a   : > { %s2583_s21 = scalar_lea.sflag [#allocation3], %s3679_s13  ;;  %s3254_s25 = scalar_lea.vmem %s3800_s30, 256 }
 0x53b   : > { %p3255_p13 = scmp.ne.s32.totalorder %s3800_s30, %s3254_s25  ;;  %s3323_s15 = smov [#allocation2]  }
 0x53c   : > { %s3258_s22 = sshll.u32 %s3323_s15, 4  ;;  %s3259_s22 = int_to_ptr.vmem [resolvable:$false] %s3258_s22 }
 0x53d   : > { %p3256_p0 = pnand %p3255_p13, %p3422_p5  ;;  %s3260_s29 = scalar_lea.vmem %s3259_s22, 512 }
 0x53e   : > { %p3261_p2 = scmp.lt.s32.totalorder %s3800_s30, %s3259_s22  ;;  %p3262_p3 = scmp.lt.s32.totalorder %s3260_s29, %s3254_s25 }
 0x53f   : > { %p3257_p1 = pneg %p3256_p0 }
 0x540   : > { %p3263_p4 = por %p3262_p3, %p3261_p2 }
 0x542   : > { %p3264_p7 = pnand %p3263_p4, %p3257_p1 }
 0x5b0   : > { %v2553_v25 = vpop.xlane.xlu1 %2552 }
 0x5b1   : > { %v2555_v26 = vmul.f32 0.03125, %v2553_v25 }
 0x5b2   : > { %v2550_v27 = vpop.xlane.xlu0 %2549 }
 0x5b3   : > { %v2557_v28 = vadd.f32 1e-05, %v2555_v26  ;;  %v2554_v29 = vmul.f32 0.03125, %v2550_v27 }
 0x5b5   : > { %3224 = vrsqrt.f32 %v2557_v28  ;;  %v2556_v30 = vadd.f32 1e-05, %v2554_v29 }
 0x5b7   : > { %3226 = vrsqrt.f32 %v2556_v30 }
 0x5c2   : > { %v3225_v31 = vpop.eup %3224 }
 0x5c3   : > { %v2561_v33 = vmul.f32 %v3225_v31, %v2545_v20 }
 0x5c4   : > { %v3227_v12 = vpop.eup %3226 }
 0x5c5   : > { %v2570_v35 = vmul.f32 %v2805_v32, %v2561_v33  ;;  %v2560_v15 = vmul.f32 %v3227_v12, %v2544_v21 }
 0x5c7   : > { %v2569_v13 = vmul.f32 %v2805_v32, %v2560_v15  ;;  %v2579_v14 = vadd.f32 %v2806_v34, %v2570_v35 }
 0x5c9   : > { %v2578_v36 = vadd.f32 %v2806_v34, %v2569_v13  ;;  %2581 = vst.msk [vmem:[%s413_s16 + $0x8] sm:$0xff] %vm455_vm0, %v2579_v14 }
 0x5cb   : > { %2580 = vst.msk [vmem:[%s413_s16] sm:$0xff] %vm455_vm0, %v2578_v36 }
 0x5cc   : > { %3267 = shalt.err (!%p3264_p7)
}
 0x5cd   : > { %s3268_s24 = scalar_lea.hbm %s3798_s14, 256  ;;  %s3272_s12 = scalar_lea.hbm %s3854_s10, 512 }
 0x5ce   : > { %p3269_p8 = scmp.ne.s32.totalorder %s3798_s14, %s3268_s24  ;;  %p3273_p11 = scmp.lt.s32.totalorder %s3798_s14, %s3854_s10 }
 0x5cf   : > { %p3274_p12 = scmp.lt.s32.totalorder %s3272_s12, %s3268_s24 }
 0x5d0   : > { %p3270_p9 = pnand %p3269_p8, %p3422_p5 }
 0x5d1   : > { %p3275_p13 = por %p3274_p12, %p3273_p11 }
 0x5d2   : > { %p3271_p10 = pneg %p3270_p9 }
 0x5d4   : > { %p3276_p0 = pnand %p3275_p13, %p3271_p10 }
 0x5d6   : > { %3279 = shalt.err (!%p3276_p0)
}
 0x5d7   : > { %s3864_s29 = smov 128  }
 0x5d8   : > { %3146 = dma.vmem_to_hbm [thread:$0]  (%p3422_p5), %s3800_s30, 256, %s3798_s14, %s2583_s21, %s3864_s29, %s3864_s29, %s3322_s3  }
 0x5d9 PF: > { %p3157_p1 = scmp.ge.s32.totalorder %s3318_s20, 2  ;;  %s2633_s25 = sand.u32 1, %s3306_s17  }
 0x5da   : > { %s2634_s22 = scalar_lea.sflag [#allocation3], %s2633_s25 }
 0x5db   : > { %p3151_p2 = pnand %p3157_p1, %p3426_p6 }
 0x5dd   : > { %p3152_p3 = pneg %p3151_p2 }
 0x5df   : > { %3297 = dma.done.wait (%p3152_p3), %s2634_s22, 256  }
 0x5e0   : > { %3299 = vsyncadd (%p3152_p3), %s2634_s22, 4294967040  ;;  %s2643_s24 = scalar_lea.sflag [#allocation5], %s2633_s25 }
 0x5e1   : > { %3301 = dma.done.wait (%p3152_p3), %s2643_s24, 1024  }
 0x5e2   : > { %3303 = vsyncadd (%p3152_p3), %s2643_s24, 4294966272  ;;  %p25_p5 = scmp.ge.s32.totalorder %s3409_s23, 4   ;;  %s3865_s17 = smov %s3310_s18 }
 0x5e3   : > { %s3866_s18 = smov %s3314_s19  ;;  %s3867_s19 = smov %s3420_s26 }
 0x5e4   : > { %s3868_s20 = smov %s3409_s23  ;;  %27 = sbr.rel (!%p25_p5) target bundleno = 8 (0x8), region = 118 }
 0x5e9   :  { %2648 = vsyncpa [#allocation3], 1 }
 0x5ea   :  { %2650 = vsyncpa [#allocation3 + $0x1], 1 }
 0x5eb   :  { %2651 = vsyncpa [#allocation5], 1 }
 0x5ec   :  { %2653 = vsyncpa [#allocation5 + $0x1], 1 }

</bundles_post_ra>
